<compile_context>
chip_gen: v7x
topology: tpu7x:2x2x1
jax: 0.10.0
libtpu: 0.0.40
codegen_flags: <defaults>
</compile_context>

<pallas_src>
import math

import jax
import jax.numpy as jnp
from jax.experimental import pallas as pl
from jax.experimental.pallas import tpu as pltpu

LANE = 128


def _round_up(x, m):
    return (x + m - 1) // m * m


def _vmem_capacity_bytes():
    """Best-effort per-core VMEM capacity; falls back to the v7x size (64 MiB)."""
    try:
        info = pltpu.get_tpu_info()
        for attr in ("vmem_capacity_bytes", "vmem_size_bytes", "vmem_bytes"):
            v = getattr(info, attr, None)
            if v:
                return int(v)
    except Exception:
        pass
    return 64 << 20


def _working_set_bytes(B, IH, tile_h, w_itemsize):
    """Approximate per-grid-step VMEM working set (2-deep pipeline)."""
    per_step = (
        IH * 4 * tile_h * w_itemsize      # fused weight column block
        + 4 * tile_h * 4                  # bias block (f32)
        + 3 * B * tile_h * 4              # cx, hy, cy blocks
    )
    resident = B * IH * w_itemsize        # xh (grid-invariant)
    gate_scratch = B * 4 * tile_h * 4     # f32 gate values
    return 2 * per_step + resident + gate_scratch


def _pick_tile_h(B, IH, Hpad, w_itemsize, *, budget, require_split):
    """Largest lane-aligned divisor of Hpad that fits `budget`.

    If `require_split` (v7x, 2 TensorCores) and Hpad >= 256, cap tile_h at
    Hpad/2 so the parallel grid axis has at least 2 tiles to shard.
    """
    n_lanes = Hpad // LANE
    for k in range(n_lanes, 0, -1):
        if n_lanes % k:
            continue
        if require_split and n_lanes >= 2 and k > n_lanes // 2:
            continue
        th = k * LANE
        if _working_set_bytes(B, IH, th, w_itemsize) <= budget:
            return th
    return LANE


def prepare_lstm_params(w_x2h, b_x2h, w_h2h, b_h2h, *,
                        matmul_dtype=jnp.bfloat16, tile_h=None, batch_hint=128):
    """One-time parameter prep.  Call OUTSIDE the per-step jit path.

    Args (torch Linear layout):
      w_x2h: (4H, I), b_x2h: (4H,), w_h2h: (4H, H), b_h2h: (4H,)
    Returns dict of arrays only (jit-friendly):
      w: (n_h, I+H, 4*tile_h) matmul_dtype -- rows [Wx ; Wh], columns per
         hidden tile laid out gate-major [i | f | g | o], lane padded.
      b: (n_h, 1, 4*tile_h) float32       -- x2h + h2h biases pre-summed,
         same column layout.
    Gate order matches torch.chunk(4, 1): [i, f, g, o].
    """
    four_h, I = w_x2h.shape
    H = four_h // 4
    assert w_h2h.shape == (4 * H, H), "w_h2h shape mismatch"
    Hpad = _round_up(H, LANE)
    IH = I + H
    w_itemsize = jnp.dtype(matmul_dtype).itemsize

    cap = _vmem_capacity_bytes()
    small_vmem = cap < (96 << 20)                 # v7x-class (64 MiB / core)
    budget = (20 << 20) if small_vmem else (56 << 20)
    if tile_h is None:
        tile_h = _pick_tile_h(batch_hint, IH, Hpad, w_itemsize,
                              budget=budget, require_split=small_vmem)
    assert tile_h % LANE == 0, "tile_h must be a multiple of 128"
    assert Hpad % tile_h == 0, "tile_h must divide the padded hidden size"
    n_h = Hpad // tile_h

    # Combined weight: gates = [x, hx] @ W, W rows = [Wx ; Wh].
    wx = jnp.asarray(w_x2h, jnp.float32).reshape(4, H, I)
    wh = jnp.asarray(w_h2h, jnp.float32).reshape(4, H, H)
    w = jnp.concatenate([wx, wh], axis=2)                 # (4, H, I+H)
    w = jnp.pad(w, ((0, 0), (0, Hpad - H), (0, 0)))       # (4, Hpad, I+H)
    w = w.reshape(4, n_h, tile_h, IH)
    w = jnp.transpose(w, (1, 3, 0, 2))                    # (n_h, I+H, 4, tile_h)
    w = w.reshape(n_h, IH, 4 * tile_h).astype(matmul_dtype)

    b = jnp.asarray(b_x2h, jnp.float32) + jnp.asarray(b_h2h, jnp.float32)
    b = jnp.pad(b.reshape(4, H), ((0, 0), (0, Hpad - H)))
    b = b.reshape(4, n_h, tile_h)
    b = jnp.transpose(b, (1, 0, 2)).reshape(n_h, 1, 4 * tile_h)

    return dict(w=w, b=b)


def lstm_cell_kernel(xh_ref, cx_ref, w_ref, b_ref, hy_ref, cy_ref):
    """One hidden-column tile: single fused matmul, all 4 gates lane-aligned."""
    th = cx_ref.shape[1]

    # Single MXU op: (B, I+H) x (I+H, 4*tile_h), f32 accumulation.
    gates = jnp.dot(xh_ref[...], w_ref[0], preferred_element_type=jnp.float32)
    gates = gates + b_ref[0]

    def sig(z):
        # sigmoid as a single tanh: one EUP push instead of exp + reciprocal.
        return 0.5 * jnp.tanh(0.5 * z) + 0.5

    ingate     = sig(gates[:, 0 * th:1 * th])
    forgetgate = sig(gates[:, 1 * th:2 * th])
    cellgate   = jnp.tanh(gates[:, 2 * th:3 * th])
    outgate    = sig(gates[:, 3 * th:4 * th])

    cx = cx_ref[...]
    cy = cx * forgetgate + ingate * cellgate
    hy = outgate * jnp.tanh(cy)

    cy_ref[...] = cy
    hy_ref[...] = hy.astype(hy_ref.dtype)


def lstm_cell(x, hx, cx, params, *, interpret=False):
    """Pallas LSTMCell forward step.

    Args:
      x:  (B, input_size)
      hx: (B, hidden_size), cx: (B, hidden_size)
      params: output of prepare_lstm_params() (arrays only -> jit friendly)
    Returns:
      (hy, cy); hy has x.dtype, cy is float32 (safe recurrent carry).
    """
    w, b = params["w"], params["b"]
    n_h, IH, four_th = w.shape
    tile_h = four_th // 4
    Hpad = n_h * tile_h

    B, I = x.shape
    H = hx.shape[1]
    assert IH == I + H, "params do not match input/hidden sizes"
    assert _round_up(H, LANE) == Hpad, "params do not match hidden size"
    mdt = w.dtype
    w_itemsize = jnp.dtype(mdt).itemsize

    # Fused activation operand: concat + matmul-dtype cast done ONCE here,
    # not per grid tile inside the kernel.
    xh = jnp.concatenate([x.astype(mdt), hx.astype(mdt)], axis=1)

    # TODO(synk): when iterating over time, keep the carry padded to Hpad across
    # steps (pad / slice once outside the loop instead of per call).
    cx_f32 = cx.astype(jnp.float32)
    if Hpad != H:
        cx_f32 = jnp.pad(cx_f32, ((0, 0), (0, Hpad - H)))

    ws = _working_set_bytes(B, IH, tile_h, w_itemsize)
    if _vmem_capacity_bytes() < (96 << 20):           # v7x: 64 MiB / core
        vmem_limit = int(min(max(ws + (8 << 20), 32 << 20), 46 << 20))
    else:                                             # v5e / v6e: 128 MiB
        vmem_limit = int(min(max(ws + (16 << 20), 48 << 20), 100 << 20))

    # Note: xh is grid-invariant; pipeline_mode=pl.Buffered(1) would drop its
    # dead second buffer, but the saving is negligible at these sizes.
    hy, cy = pl.pallas_call(
        lstm_cell_kernel,
        out_shape=(
            jax.ShapeDtypeStruct((B, Hpad), x.dtype),      # hy
            jax.ShapeDtypeStruct((B, Hpad), jnp.float32),  # cy (f32 carry)
        ),
        grid=(n_h,),
        in_specs=[
            pl.BlockSpec((B, IH), lambda j: (0, 0)),                # xh
            pl.BlockSpec((B, tile_h), lambda j: (0, j)),            # cx
            pl.BlockSpec((1, IH, 4 * tile_h), lambda j: (j, 0, 0)), # fused W
            pl.BlockSpec((1, 1, 4 * tile_h), lambda j: (j, 0, 0)),  # bias
        ],
        out_specs=(
            pl.BlockSpec((B, tile_h), lambda j: (0, j)),
            pl.BlockSpec((B, tile_h), lambda j: (0, j)),
        ),
        compiler_params=pltpu.CompilerParams(
            dimension_semantics=("parallel",),
            vmem_limit_bytes=vmem_limit,
        ),
        interpret=interpret,
    )(xh, cx_f32, w, b)

    if Hpad != H:
        hy = hy[:, :H]
        cy = cy[:, :H]
    return hy, cy


def reference_lstm_cell(x, hx, cx, w_x2h, b_x2h, w_h2h, b_h2h, matmul_dtype=None):
    """Pure-JAX reference. matmul_dtype=bf16 mimics the kernel's MXU operands."""
    if matmul_dtype is not None:
        cast = lambda a: a.astype(matmul_dtype)
        gates = (
            jnp.dot(cast(x), cast(w_x2h.T), preferred_element_type=jnp.float32)
            + jnp.dot(cast(hx), cast(w_h2h.T), preferred_element_type=jnp.float32)
            + b_x2h + b_h2h
        )
    else:
        gates = x @ w_x2h.T + b_x2h + hx @ w_h2h.T + b_h2h
    i, f, g, o = jnp.split(gates, 4, axis=1)
    i = jax.nn.sigmoid(i)
    f = jax.nn.sigmoid(f)
    g = jnp.tanh(g)
    o = jax.nn.sigmoid(o)
    cy = cx * f + i * g
    hy = o * jnp.tanh(cy)
    return hy, cy


if __name__ == "__main__":
    B, I, H = 8, 16, 32
    key = jax.random.PRNGKey(0)
    kx, kh, kc, k1, k2, k3, k4 = jax.random.split(key, 7)

    x = jax.random.normal(kx, (B, I), dtype=jnp.float32)
    hx = jax.random.normal(kh, (B, H), dtype=jnp.float32)
    cx = jax.random.normal(kc, (B, H), dtype=jnp.float32)

    # reset_parameters(): uniform(-std, std), std = 1/sqrt(hidden_size)
    std = 1.0 / math.sqrt(H)
    w_x2h = jax.random.uniform(k1, (4 * H, I), jnp.float32, -std, std)
    b_x2h = jax.random.uniform(k2, (4 * H,), jnp.float32, -std, std)
    w_h2h = jax.random.uniform(k3, (4 * H, H), jnp.float32, -std, std)
    b_h2h = jax.random.uniform(k4, (4 * H,), jnp.float32, -std, std)

    # One-time parameter prep (NOT inside the per-step jit path).
    params = prepare_lstm_params(w_x2h, b_x2h, w_h2h, b_h2h, batch_hint=B)
    params = jax.block_until_ready(params)

    step = jax.jit(lstm_cell)
    hy, cy = step(x, hx, cx, params)
    jax.block_until_ready((hy, cy))

    # Tight check against a reference that mimics the bf16 MXU operands.
    hy_q, cy_q = reference_lstm_cell(
        x, hx, cx, w_x2h, b_x2h, w_h2h, b_h2h, matmul_dtype=jnp.bfloat16)
    assert jnp.allclose(hy, hy_q, atol=2e-3, rtol=2e-3), "hy mismatch (bf16 ref)"
    assert jnp.allclose(cy, cy_q, atol=2e-3, rtol=2e-3), "cy mismatch (bf16 ref)"

    # Loose sanity check against the pure-f32 reference.
    hy_ref, cy_ref = reference_lstm_cell(x, hx, cx, w_x2h, b_x2h, w_h2h, b_h2h)
    assert jnp.allclose(hy, hy_ref, atol=5e-2, rtol=5e-2), "hy mismatch (f32 ref)"
    assert jnp.allclose(cy, cy_ref, atol=5e-2, rtol=5e-2), "cy mismatch (f32 ref)"

    print("KERNEL_OK")
</pallas_src>

<mosaic_0001>
module attributes {stable_mosaic.version = 11 : i64} {
  func.func @lstm_cell_kernel(%arg0: i32, %arg1: memref<8x48xbf16, #tpu.memory_space<vmem>>, %arg2: memref<8x128xf32, #tpu.memory_space<vmem>>, %arg3: memref<1x48x512xbf16, #tpu.memory_space<vmem>>, %arg4: memref<1x1x512xf32, #tpu.memory_space<vmem>>, %arg5: memref<8x128xf32, #tpu.memory_space<vmem>>, %arg6: memref<8x128xf32, #tpu.memory_space<vmem>>) attributes {dimension_semantics = [#tpu.dimension_semantics<parallel>], iteration_bounds = array<i64: 1>, scalar_prefetch = 0 : i64, scratch_operands = 0 : i64, tpu.core_type = #tpu.core_type<tc>, window_params = [{pipeline_mode = #tpu.pipeline_mode<synchronous>, transform_indices = @transform_0, window_bounds = array<i64: 8, 48>}, {transform_indices = @transform_1, window_bounds = array<i64: 8, 128>}, {transform_indices = @transform_2, window_bounds = array<i64: 1, 48, 512>}, {transform_indices = @transform_3, window_bounds = array<i64: 1, 1, 512>}, {transform_indices = @transform_4, window_bounds = array<i64: 8, 128>}, {transform_indices = @transform_5, window_bounds = array<i64: 8, 128>}]} {
    %c0 = arith.constant 0 : index
    %c0_0 = arith.constant 0 : index
    %0 = vector.load %arg1[%c0, %c0_0] : memref<8x48xbf16, #tpu.memory_space<vmem>>, vector<8x48xbf16>
    %c0_1 = arith.constant 0 : index
    %c0_2 = arith.constant 0 : index
    %c0_3 = arith.constant 0 : index
    %1 = vector.load %arg3[%c0_1, %c0_2, %c0_3] : memref<1x48x512xbf16, #tpu.memory_space<vmem>>, vector<1x48x512xbf16>
    %2 = vector.shape_cast %1 : vector<1x48x512xbf16> to vector<48x512xbf16>
    %cst = arith.constant dense<0.000000e+00> : vector<8x512xf32>
    %3 = tpu.matmul %0, %2, %cst {dimension_numbers = #tpu.dot_dimension_numbers<[1], [0], [0], [1], [0, 0, 1, 1], [], []>} : vector<8x48xbf16>, vector<48x512xbf16>, vector<8x512xf32> -> vector<8x512xf32>
    %c0_4 = arith.constant 0 : index
    %c0_5 = arith.constant 0 : index
    %c0_6 = arith.constant 0 : index
    %4 = vector.load %arg4[%c0_4, %c0_5, %c0_6] : memref<1x1x512xf32, #tpu.memory_space<vmem>>, vector<1x1x512xf32>
    %5 = vector.shape_cast %4 : vector<1x1x512xf32> to vector<1x512xf32>
    %6 = vector.broadcast %5 : vector<1x512xf32> to vector<8x512xf32>
    %7 = arith.addf %3, %6 : vector<8x512xf32>
    %8 = vector.extract_strided_slice %7 {offsets = [0, 0], sizes = [8, 128], strides = [1, 1]} : vector<8x512xf32> to vector<8x128xf32>
    %cst_7 = arith.constant 5.000000e-01 : f32
    %9 = vector.broadcast %cst_7 : f32 to vector<8x128xf32>
    %10 = arith.mulf %9, %8 : vector<8x128xf32>
    %11 = math.tanh %10 : vector<8x128xf32>
    %cst_8 = arith.constant 5.000000e-01 : f32
    %12 = vector.broadcast %cst_8 : f32 to vector<8x128xf32>
    %13 = arith.mulf %12, %11 : vector<8x128xf32>
    %cst_9 = arith.constant 5.000000e-01 : f32
    %14 = vector.broadcast %cst_9 : f32 to vector<8x128xf32>
    %15 = arith.addf %13, %14 : vector<8x128xf32>
    %16 = vector.extract_strided_slice %7 {offsets = [0, 128], sizes = [8, 128], strides = [1, 1]} : vector<8x512xf32> to vector<8x128xf32>
    %cst_10 = arith.constant 5.000000e-01 : f32
    %17 = vector.broadcast %cst_10 : f32 to vector<8x128xf32>
    %18 = arith.mulf %17, %16 : vector<8x128xf32>
    %19 = math.tanh %18 : vector<8x128xf32>
    %cst_11 = arith.constant 5.000000e-01 : f32
    %20 = vector.broadcast %cst_11 : f32 to vector<8x128xf32>
    %21 = arith.mulf %20, %19 : vector<8x128xf32>
    %cst_12 = arith.constant 5.000000e-01 : f32
    %22 = vector.broadcast %cst_12 : f32 to vector<8x128xf32>
    %23 = arith.addf %21, %22 : vector<8x128xf32>
    %24 = vector.extract_strided_slice %7 {offsets = [0, 256], sizes = [8, 128], strides = [1, 1]} : vector<8x512xf32> to vector<8x128xf32>
    %25 = math.tanh %24 : vector<8x128xf32>
    %26 = vector.extract_strided_slice %7 {offsets = [0, 384], sizes = [8, 128], strides = [1, 1]} : vector<8x512xf32> to vector<8x128xf32>
    %cst_13 = arith.constant 5.000000e-01 : f32
    %27 = vector.broadcast %cst_13 : f32 to vector<8x128xf32>
    %28 = arith.mulf %27, %26 : vector<8x128xf32>
    %29 = math.tanh %28 : vector<8x128xf32>
    %cst_14 = arith.constant 5.000000e-01 : f32
    %30 = vector.broadcast %cst_14 : f32 to vector<8x128xf32>
    %31 = arith.mulf %30, %29 : vector<8x128xf32>
    %cst_15 = arith.constant 5.000000e-01 : f32
    %32 = vector.broadcast %cst_15 : f32 to vector<8x128xf32>
    %33 = arith.addf %31, %32 : vector<8x128xf32>
    %c0_16 = arith.constant 0 : index
    %c0_17 = arith.constant 0 : index
    %34 = vector.load %arg2[%c0_16, %c0_17] : memref<8x128xf32, #tpu.memory_space<vmem>>, vector<8x128xf32>
    %35 = arith.mulf %34, %23 : vector<8x128xf32>
    %36 = arith.mulf %15, %25 : vector<8x128xf32>
    %37 = arith.addf %35, %36 : vector<8x128xf32>
    %38 = math.tanh %37 : vector<8x128xf32>
    %39 = arith.mulf %33, %38 : vector<8x128xf32>
    %c0_18 = arith.constant 0 : index
    %c0_19 = arith.constant 0 : index
    %40 = vector.load %arg6[%c0_18, %c0_19] : memref<8x128xf32, #tpu.memory_space<vmem>>, vector<8x128xf32>
    tpu.vector_store %arg6[%c0_18, %c0_19], %37 {strides = array<i32>} : memref<8x128xf32, #tpu.memory_space<vmem>>, vector<8x128xf32>,
    %c0_20 = arith.constant 0 : index
    %c0_21 = arith.constant 0 : index
    %41 = vector.load %arg5[%c0_20, %c0_21] : memref<8x128xf32, #tpu.memory_space<vmem>>, vector<8x128xf32>
    tpu.vector_store %arg5[%c0_20, %c0_21], %39 {strides = array<i32>} : memref<8x128xf32, #tpu.memory_space<vmem>>, vector<8x128xf32>,
    return
  }
  func.func @transform_0(%arg0: i32) -> (i32, i32) {
    %c0_i32 = arith.constant 0 : i32
    %c0_i32_0 = arith.constant 0 : i32
    %c0_i32_1 = arith.constant 0 : i32
    return %c0_i32, %c0_i32_0 : i32, i32
  }
  func.func @transform_1(%arg0: i32) -> (i32, i32) {
    %c0_i32 = arith.constant 0 : i32
    %c0_i32_0 = arith.constant 0 : i32
    return %c0_i32, %arg0 : i32, i32
  }
  func.func @transform_2(%arg0: i32) -> (i32, i32, i32) {
    %c0_i32 = arith.constant 0 : i32
    %c0_i32_0 = arith.constant 0 : i32
    %c0_i32_1 = arith.constant 0 : i32
    return %arg0, %c0_i32, %c0_i32_0 : i32, i32, i32
  }
  func.func @transform_3(%arg0: i32) -> (i32, i32, i32) {
    %c0_i32 = arith.constant 0 : i32
    %c0_i32_0 = arith.constant 0 : i32
    %c0_i32_1 = arith.constant 0 : i32
    return %arg0, %c0_i32, %c0_i32_0 : i32, i32, i32
  }
  func.func @transform_4(%arg0: i32) -> (i32, i32) {
    %c0_i32 = arith.constant 0 : i32
    %c0_i32_0 = arith.constant 0 : i32
    return %c0_i32, %arg0 : i32, i32
  }
  func.func @transform_5(%arg0: i32) -> (i32, i32) {
    %c0_i32 = arith.constant 0 : i32
    %c0_i32_0 = arith.constant 0 : i32
    return %c0_i32, %arg0 : i32, i32
  }
}

</mosaic_0001>

<bundles_post_ra>
// kernel: lstm_cell.1
= control target key start
LH: loop header
LB: loop body
LE: loop exit
PB: predicated region body
PF: predicated region fallthrough
CT: control target
= control target key end

     0   :  { %11 = vsyncpa [#allocation3], 0  ;;  %s468_s0 = inlined_call_operand.vmem [shape: bf16[8,48], index: 0, kind: input, shape index: {}]   ;;  %s469_s1 = inlined_call_operand.vmem [shape: f32[8,128], index: 1, kind: input, shape index: {}]   ;;  %s470_s2 = inlined_call_operand.hbm [shape: bf16[1,48,512], index: 2, kind: input, shape index: {}]   ;;  %s471_s3 = inlined_call_operand.vmem [shape: f32[1,1,512], index: 3, kind: input, shape index: {}]   ;;  %s472_s4 = inlined_call_operand.hbm [shape: f32[8,128], index: 4, kind: output, shape index: {0}]   ;;  %s473_s5 = inlined_call_operand.hbm [shape: f32[8,128], index: 5, kind: output, shape index: {1}]  }
   0x1   :  { %12 = vsyncpa [#allocation4], 0 }
   0x2   :  { %13 = vsyncpa [#allocation7], 0  ;;  %s387_s18 = smov [#allocation2]   ;;  %s315_s22 = scalar_lea.hbm %s470_s2, 1536 }
   0x3   :  { %s23_s19 = sshll.u32 %s387_s18, 4  ;;  %p316_p0 = scmp.ne.s32.totalorder %s470_s2, %s315_s22  ;;  %s24_s19 = int_to_ptr.vmem [resolvable:$true] %s23_s19 }
   0x4   :  { %p319_p1 = scmp.lt.u32.totalorder %s315_s22, %s470_s2 }
   0x6   :  { %p321_p2 = pnand %p319_p1, %p316_p0 }
   0x8   :  { %324 = shalt.err (!%p321_p2)
}
   0x9   :  { %s325_s27 = scalar_lea.vmem %s24_s19, 1536  ;;  %p330_p4 = scmp.lt.s32.totalorder %s24_s19, %s24_s19 }
   0xa   :  { %p326_p3 = scmp.ne.s32.totalorder %s24_s19, %s325_s27  ;;  %p331_p5 = scmp.lt.s32.totalorder %s325_s27, %s325_s27 }
   0xc   :  { %p332_p6 = por %p331_p5, %p330_p4 }
   0xe   :  { %p333_p7 = pnand %p332_p6, %p326_p3 }
  0x10   :  { %336 = shalt.err (!%p333_p7)
}
  0x11   :  { %s388_s28 = smov 256   ;;  %s389_s29 = smov 16  }
  0x12   :  { %29 = dma.hbm_to_vmem [thread:$0]  %s470_s2, 1536, %s24_s19, [#allocation3], %s388_s28, %s388_s28, %s389_s29  }
  0x13   :  { %381 = dma.done.wait [#allocation3], 1536  }
  0x14   :  { %382 = vsyncadd [#allocation3], 4294965760  ;;  %v390_v0 = vmov 0   ;;  %v287_v1 = vld [vmem:[#allocation2 + $0x4] ss:$16 sps:$4 sm:$0xff]   ;;  %vm131_vm0 = vcmask 392192   ;;  %v51_v14 = vlaneseq }
  0x15   :  { %167 = vmatprep.mubr.bf16.mxu0 %v390_v0  ;;  %208 = vmatprep.mubr.bf16.mxu1 %v390_v0  ;;  %v289_v2 = vld [vmem:[#allocation2] ss:$16 sps:$4 sm:$0xff]   ;;  %v290_v3 = vld [vmem:[#allocation2 + $0x24] ss:$16 sps:$4 sm:$0xff]   ;;  %v292_v4 = vld [vmem:[#allocation2 + $0xc] ss:$16 sps:$4 sm:$0xff]  }
  0x16   :  { %135 = vmatprep.subr.bf16.mxu0 %v287_v1  ;;  %v294_v5 = vld [vmem:[#allocation2 + $0x20] ss:$16 sps:$4 sm:$0xff]   ;;  %v295_v6 = vld [vmem:[#allocation2 + $0x8] ss:$16 sps:$4 sm:$0xff]   ;;  %v296_v7 = vld [vmem:[#allocation2 + $0x44] ss:$16 sps:$4 sm:$0xff]   ;;  %176 = vmatprep.subr.bf16.mxu1 %v292_v4 }
  0x17   :  { %136 = vmatpush1.bf16.msra.mxu0 %v289_v2  ;;  %v298_v8 = vld [vmem:[#allocation2 + $0x2c] ss:$16 sps:$4 sm:$0xff]   ;;  %177 = vmatpush1.bf16.msra.mxu1 %v295_v6  ;;  %v300_v9 = vld [vmem:[#allocation2 + $0x40] ss:$16 sps:$4 sm:$0xff]   ;;  %v301_v10 = vld [vmem:[#allocation2 + $0x28] ss:$16 sps:$4 sm:$0xff]  }
  0x18   :  { %137 = vmatprep.subr.bf16.mxu0 %v290_v3  ;;  %178 = vmatprep.subr.bf16.mxu1 %v298_v8  ;;  %v302_v11 = vld [vmem:[#allocation2 + $0x4c] ss:$16 sps:$4 sm:$0xff]   ;;  %v304_v12 = vld [vmem:[#allocation2 + $0x48] ss:$16 sps:$4 sm:$0xff]   ;;  %v36_v13 = vld [vmem:[%s468_s0] sm:$0xf] }
  0x19   :  { %v52_v15 = vshrl.u32 %v51_v14, 7  ;;  %v49_v17 = vld [vmem:[%s471_s3] sm:$0xf]  ;;  %s391_s10 = smov [#allocation6]  }
  0x1a   :  { %v230_v46 = vld [vmem:[%s469_s1] sm:$0xff]  ;;  %s254_s11 = sshll.u32 %s391_s10, 4  ;;  %s255_s11 = int_to_ptr.vmem [resolvable:$true] %s254_s11 }
  0x1b   :  { %138 = vmatpush1.bf16.msra.mxu0 %v294_v5  ;;  %179 = vmatpush1.bf16.msra.mxu1 %v301_v10  ;;  %v53_v16 = vsub.s32 0, %v52_v15  ;;  %v57_v18 = vsub.s32 1, %v52_v15  ;;  %v61_v19 = vsub.s32 2, %v52_v15  ;;  %v65_v26 = vsub.s32 3, %v52_v15  ;;  %s337_s12 = scalar_lea.vmem %s255_s11, 128  ;;  %p342_p9 = scmp.lt.s32.totalorder %s255_s11, %s255_s11 }
  0x1c   :  { %139 = vmatprep.subr.bf16.mxu0 %v296_v7  ;;  %180 = vmatprep.subr.bf16.mxu1 %v302_v11  ;;  %p338_p8 = scmp.ne.s32.totalorder %s255_s11, %s337_s12  ;;  %p343_p10 = scmp.lt.s32.totalorder %s337_s12, %s337_s12 }
  0x1d   :  { %v54_v20 = vrot.slane %v49_v17, %v53_v16  ;;  %v58_v21 = vrot.slane %v49_v17, %v57_v18  ;;  %v62_v23 = vrot.slane %v49_v17, %v61_v19  ;;  %v66_v35 = vrot.slane %v49_v17, %v65_v26 }
  0x1e   :  { %p344_p11 = por %p343_p10, %p342_p9 }
  0x1f   :  { %140 = vmatpush1.bf16.msra.mxu0 %v300_v9  ;;  %181 = vmatpush1.bf16.msra.mxu1 %v304_v12 }
  0x20   :  { %p345_p12 = pnand %p344_p11, %p338_p8 }
  0x22   :  { %279 = vmatmul.mubr.msk.bf16.vlgmr.msra.gmra.mrb[0].mxu0 %vm131_vm0, %v36_v13  ;;  %280 = vmatmul.mubr.msk.bf16.vlgmr.msra.gmra.mrb[0].mxu1 %vm131_vm0, %v36_v13 }
  0xf5   :  { %v169_v22 = vpop.f32.mrb[0].mxu0  ;;  %v210_v31 = vpop.f32.mrb[0].mxu1 }
  0xf6   :  { %v170_v24 = vadd.f32 %v169_v22, %v54_v20  ;;  %v171_v25 = vpop.f32.mrb[1].mxu0  ;;  %v211_v33 = vadd.f32 %v210_v31, %v62_v23  ;;  %v212_v34 = vpop.f32.mrb[1].mxu1 }
  0xf7   :  { %v172_v27 = vadd.f32 %v171_v25, %v58_v21  ;;  %v173_v28 = vpop.f32.mrb[2].mxu0  ;;  %v214_v36 = vpop.f32.mrb[2].mxu1  ;;  %v213_v38 = vadd.f32 %v212_v34, %v66_v35 }
  0xf8   :  { %v217_v29 = vmul.f32 0.5, %v170_v24  ;;  %v174_v30 = vpop.f32.mrb[3].mxu0  ;;  %v215_v37 = vpop.f32.mrb[3].mxu1 }
  0xf9   :  { %v221_v32 = vmul.f32 0.5, %v172_v27  ;;  %v226_v39 = vmul.f32 0.5, %v213_v38 }
  0xfa   :  { %305 = vtanh.f32 %v217_v29 }
  0xfb   :  { %307 = vtanh.f32 %v221_v32 }
  0xfc   :  { %309 = vtanh.f32 %v211_v33 }
  0xfd   :  { %311 = vtanh.f32 %v226_v39 }
 0x104   :  { %v306_v40 = vpop.eup %305 }
 0x105   :  { %v308_v41 = vpop.eup %307  ;;  %v219_v42 = vmul.f32 0.5, %v306_v40 }
 0x106   :  { %v310_v43 = vpop.eup %309  ;;  %v223_v44 = vmul.f32 0.5, %v308_v41 }
 0x107   :  { %v220_v45 = vadd.f32 0.5, %v219_v42 }
 0x108   :  { %v224_v47 = vadd.f32 0.5, %v223_v44 }
 0x109   :  { %v232_v48 = vmul.f32 %v310_v43, %v220_v45 }
 0x10a   :  { %v231_v49 = vmul.f32 %v230_v46, %v224_v47 }
 0x10c   :  { %v233_v50 = vadd.f32 %v232_v48, %v231_v49 }
 0x10e   :  { %236 = vst [vmem:[#allocation6] sm:$0xff] %v233_v50  ;;  %313 = vtanh.f32 %v233_v50 }
 0x10f   :  { %348 = shalt.err (!%p345_p12)
}
 0x110   :  { %s349_s1 = scalar_lea.hbm %s473_s5, 128 }
 0x111   :  { %p350_p13 = scmp.ne.s32.totalorder %s473_s5, %s349_s1  ;;  %p353_p0 = scmp.lt.u32.totalorder %s349_s1, %s473_s5 }
 0x113   :  { %p355_p1 = pnand %p353_p0, %p350_p13 }
 0x115   :  { %358 = shalt.err (!%p355_p1)
}
 0x116   :  { %257 = dma.vmem_to_hbm [thread:$0]  %s255_s11, 128, %s473_s5, [#allocation7]   ;;  %v312_v51 = vpop.eup %311 }
 0x117   :  { %v228_v52 = vmul.f32 0.5, %v312_v51  ;;  %s392_s21 = smov [#allocation5]  }
 0x118   :  { %s244_s22 = sshll.u32 %s392_s21, 4  ;;  %v314_v54 = vpop.eup %313  ;;  %s245_s22 = int_to_ptr.vmem [resolvable:$true] %s244_s22 }
 0x119   :  { %v229_v53 = vadd.f32 0.5, %v228_v52  ;;  %s359_s23 = scalar_lea.vmem %s245_s22, 128  ;;  %p364_p3 = scmp.lt.s32.totalorder %s245_s22, %s245_s22 }
 0x11a   :  { %p360_p2 = scmp.ne.s32.totalorder %s245_s22, %s359_s23  ;;  %p365_p4 = scmp.lt.s32.totalorder %s359_s23, %s359_s23 }
 0x11b   :  { %v235_v55 = vmul.f32 %v314_v54, %v229_v53 }
 0x11c   :  { %p366_p5 = por %p365_p4, %p364_p3 }
 0x11d   :  { %237 = vst [vmem:[#allocation5] sm:$0xff] %v235_v55 }
 0x11e   :  { %p367_p6 = pnand %p366_p5, %p360_p2 }
 0x120   :  { %370 = shalt.err (!%p367_p6)
}
 0x121   :  { %s371_s5 = scalar_lea.hbm %s472_s4, 128 }
 0x122   :  { %p372_p7 = scmp.ne.s32.totalorder %s472_s4, %s371_s5  ;;  %p375_p8 = scmp.lt.u32.totalorder %s371_s5, %s472_s4 }
 0x124   :  { %p377_p9 = pnand %p375_p8, %p372_p7 }
 0x126   :  { %380 = shalt.err (!%p377_p9)
}
 0x127   :  { %247 = dma.vmem_to_hbm [thread:$0]  %s245_s22, 128, %s472_s4, [#allocation4]  }
 0x128   :  { %383 = dma.done.wait [#allocation4], 128  }
 0x129   :  { %384 = vsyncadd [#allocation4], 4294967168 }
 0x12a   :  { %385 = dma.done.wait [#allocation7], 128  }
 0x12b   :  { %386 = vsyncadd [#allocation7], 4294967168 }
 0x12c   :  { %264 = vsyncpa [#allocation3], 1 }
 0x12d   :  { %265 = vsyncpa [#allocation4], 1 }
 0x12e   :  { %266 = vsyncpa [#allocation7], 1 }

</bundles_post_ra>
